<compile_context>
chip_gen: v7x
topology: tpu7x:2x2x1
jax: 0.10.0
libtpu: 0.0.40
codegen_flags: <defaults>
</compile_context>

<pallas_src>
import jax
import jax.numpy as jnp
from jax import lax
from jax.experimental import pallas as pl
from jax.experimental.pallas import tpu as pltpu

# ---- sizes (small, consistent with the forward's interface) ----
N_PATCH = 8      # number of WSI patch/region features in the bag
D_WSI   = 32     # WSI feature dim
D_GENE  = 32     # gene (mutation / rnaseq) feature dim
HIDDEN  = 32     # hidden dim of the surrogate MLPs
N_CLS   = 4      # survival bins (n_classes)

assert D_WSI == D_GENE == HIDDEN  # packing below relies on these being equal

# packed-parameter slab / output geometry (f32, lane-dense)
_P_ROWS   = 40    # 32 weight rows + 1 bias row + 7 zero-pad rows (multiple of 8)
_P_LANES  = 128
_OUT_ROWS = 8     # lane-dense (8, 128) output tile


def pack_params(params):
    """ONE-TIME (model-load) packing of the 8 parameter tensors into a single
    lane-dense [40, 128] f32 slab (one dense HBM->VMEM DMA per forward).

    Lane layout (rows 0:32 = weights, row 32 = biases, rows 33:40 = zero pad):
        lanes [ 0:32]  w1            | wb1
        lanes [32:64]  g1            | gb1
        lanes [64:68]  wc / N_PATCH  | wbc     (mean-pool scale folded in)
        lanes [68:72]  0             | gbc
        lanes [72:76]  0             | 0
        lanes [76:80]  gc            | 0
    """
    w1, wb1, wc, wbc, g1, gb1, gc, gbc = params
    slab = jnp.zeros((_P_ROWS, _P_LANES), jnp.float32)
    slab = slab.at[0:HIDDEN, 0:32].set(w1)
    slab = slab.at[0:HIDDEN, 32:64].set(g1)
    slab = slab.at[0:HIDDEN, 64:68].set(wc / N_PATCH)
    slab = slab.at[0:HIDDEN, 76:80].set(gc)
    slab = slab.at[HIDDEN, 0:32].set(wb1[0])
    slab = slab.at[HIDDEN, 32:64].set(gb1[0])
    slab = slab.at[HIDDEN, 64:68].set(wbc[0])
    slab = slab.at[HIDDEN, 68:72].set(gbc[0])
    return slab


def mm_simple_kernel(wsi_ref, mut_ref, p_ref, s_ref):
    # wsi_ref: [N_PATCH, D_WSI]   raw WSI patch features
    # mut_ref: [1, D_GENE]        raw mutation features
    # p_ref  : [40, 128]          pre-packed parameter slab (see pack_params)
    # s_ref  : [8, 128]           lane-dense output; S lives at [0, 0:N_CLS]
    H = HIDDEN

    # ---- layer 1 (both branches), biases broadcast-added, ReLU on the VPU ----
    h_w = jnp.maximum(
        jnp.dot(wsi_ref[...], p_ref[0:H, 0:32],
                preferred_element_type=jnp.float32) + p_ref[H:H + 1, 0:32],
        0.0)                                                     # [N_PATCH, H]
    h_m = jnp.maximum(
        jnp.dot(mut_ref[...], p_ref[0:H, 32:64],
                preferred_element_type=jnp.float32) + p_ref[H:H + 1, 32:64],
        0.0)                                                     # [1, H]

    # ---- classifiers: wsi weights occupy lanes 0:4, gene weights lanes 4:8 of
    # their [H, 8] blocks, so both branches' logits land in one [1, 8] row with
    # no in-kernel concatenate (off-branch lanes are exact zeros).
    lw = jnp.dot(h_w, p_ref[0:H, 64:72],
                 preferred_element_type=jnp.float32)             # [N_PATCH, 8], lanes 4:8 = 0
    lm = jnp.dot(h_m, p_ref[0:H, 72:80],
                 preferred_element_type=jnp.float32)             # [1, 8],       lanes 0:4 = 0
    # mean-pool over patches = post-matmul sublane sum (1/N_PATCH folded into wc)
    logits = jnp.sum(lw, axis=0, keepdims=True) + lm + p_ref[H:H + 1, 64:72]   # [1, 8]

    # ---- single sigmoid / survival pass over both branches ----
    om = 1.0 - jax.nn.sigmoid(logits)                            # [1, 8]

    # Dual running prefix product (unrolled, N_CLS tiny); writes the averaged
    # survival S = 0.5 * (S_wsi + S_mut) directly into a full (8,128) tile so
    # the final store is a plain unmasked vst.
    row  = lax.broadcasted_iota(jnp.int32, (_OUT_ROWS, _P_LANES), 0)
    lane = lax.broadcasted_iota(jnp.int32, (_OUT_ROWS, _P_LANES), 1)
    run_w = om[:, 0:1]
    run_m = om[:, N_CLS:N_CLS + 1]
    acc = jnp.where((row == 0) & (lane == 0), run_w + run_m, 0.0)
    for i in range(1, N_CLS):
        run_w = run_w * om[:, i:i + 1]
        run_m = run_m * om[:, N_CLS + i:N_CLS + i + 1]
        acc = acc + jnp.where((row == 0) & (lane == i), run_w + run_m, 0.0)
    s_ref[...] = 0.5 * acc


def mm_simple_forward(wsi, mut, rna, packed_params):
    """Returns (None, S, None, None, None) like MM_SIMPLE.forward (agg='mean')."""
    del rna  # TODO(synk): rnaseq branch is run by MM_SIMPLE but its outputs are
    #          discarded under agg='mean', so it is not computed here.
    s_full = pl.pallas_call(
        mm_simple_kernel,
        out_shape=jax.ShapeDtypeStruct((_OUT_ROWS, _P_LANES), jnp.float32),
        in_specs=[pl.BlockSpec(memory_space=pltpu.MemorySpace.VMEM)] * 3,
        out_specs=pl.BlockSpec(memory_space=pltpu.MemorySpace.VMEM),
    )(wsi, mut, packed_params)
    S = s_full[0:1, 0:N_CLS]          # lane-dense padded result -> [1, N_CLS]
    return (None, S, None, None, None)


def _reference(wsi, mut, params):
    """Plain-JAX reference of the same surrogate forward (for validation)."""
    (w1, wb1, wc, wbc, g1, gb1, gc, gbc) = params
    h = jnp.maximum(wsi @ w1 + wb1, 0.0)
    lw = jnp.mean(h, axis=0, keepdims=True) @ wc + wbc
    sw = jnp.cumprod(1.0 - jax.nn.sigmoid(lw), axis=1)
    hm = jnp.maximum(mut @ g1 + gb1, 0.0)
    lm = hm @ gc + gbc
    sm = jnp.cumprod(1.0 - jax.nn.sigmoid(lm), axis=1)
    return 0.5 * (sw + sm)


if __name__ == "__main__":
    key = jax.random.PRNGKey(0)
    keys = jax.random.split(key, 12)

    # deterministic synthetic "checkpoint" parameters
    w1  = 0.1 * jax.random.normal(keys[0], (D_WSI, HIDDEN),  jnp.float32)
    wb1 = 0.1 * jax.random.normal(keys[1], (1, HIDDEN),      jnp.float32)
    wc  = 0.1 * jax.random.normal(keys[2], (HIDDEN, N_CLS),  jnp.float32)
    wbc = 0.1 * jax.random.normal(keys[3], (1, N_CLS),       jnp.float32)
    g1  = 0.1 * jax.random.normal(keys[4], (D_GENE, HIDDEN), jnp.float32)
    gb1 = 0.1 * jax.random.normal(keys[5], (1, HIDDEN),      jnp.float32)
    gc  = 0.1 * jax.random.normal(keys[6], (HIDDEN, N_CLS),  jnp.float32)
    gbc = 0.1 * jax.random.normal(keys[7], (1, N_CLS),       jnp.float32)
    params = (w1, wb1, wc, wbc, g1, gb1, gc, gbc)

    # "model load time": pack parameters ONCE; reused for every forward call.
    packed = jax.block_until_ready(pack_params(params))

    # deterministic example inputs
    wsi = jax.random.normal(keys[8],  (N_PATCH, D_WSI), jnp.float32)
    mut = jax.random.normal(keys[9],  (1, D_GENE),      jnp.float32)
    rna = jax.random.normal(keys[10], (1, D_GENE),      jnp.float32)

    forward = jax.jit(mm_simple_forward)
    _, S, _, _, _ = forward(wsi, mut, rna, packed)
    S = jax.block_until_ready(S)

    S_ref = _reference(wsi, mut, params)
    assert S.shape == (1, N_CLS)
    assert jnp.allclose(S, S_ref, atol=1e-5, rtol=1e-4), (S, S_ref)
    print("KERNEL_OK")
</pallas_src>

<mosaic_0001>
module attributes {stable_mosaic.version = 11 : i64} {
  func.func @mm_simple_kernel(%arg0: memref<8x32xf32, #tpu.memory_space<vmem>>, %arg1: memref<1x32xf32, #tpu.memory_space<vmem>>, %arg2: memref<40x128xf32, #tpu.memory_space<vmem>>, %arg3: memref<8x128xf32, #tpu.memory_space<vmem>>) attributes {dimension_semantics = [], scalar_prefetch = 0 : i64, scratch_operands = 0 : i64, tpu.core_type = #tpu.core_type<tc>} {
    %c0 = arith.constant 0 : index
    %c0_0 = arith.constant 0 : index
    %0 = vector.load %arg0[%c0, %c0_0] : memref<8x32xf32, #tpu.memory_space<vmem>>, vector<8x32xf32>
    %c0_1 = arith.constant 0 : index
    %c0_2 = arith.constant 0 : index
    %1 = vector.load %arg2[%c0_1, %c0_2] : memref<40x128xf32, #tpu.memory_space<vmem>>, vector<32x32xf32>
    %cst = arith.constant dense<0.000000e+00> : vector<8x32xf32>
    %2 = tpu.matmul %0, %1, %cst {dimension_numbers = #tpu.dot_dimension_numbers<[1], [0], [0], [1], [0, 0, 1, 1], [], []>} : vector<8x32xf32>, vector<32x32xf32>, vector<8x32xf32> -> vector<8x32xf32>
    %c32 = arith.constant 32 : index
    %c0_3 = arith.constant 0 : index
    %3 = vector.load %arg2[%c32, %c0_3] : memref<40x128xf32, #tpu.memory_space<vmem>>, vector<1x32xf32>
    %4 = vector.broadcast %3 : vector<1x32xf32> to vector<8x32xf32>
    %5 = arith.addf %2, %4 : vector<8x32xf32>
    %cst_4 = arith.constant 0.000000e+00 : f32
    %6 = vector.broadcast %cst_4 : f32 to vector<8x32xf32>
    %7 = arith.maximumf %5, %6 : vector<8x32xf32>
    %c0_5 = arith.constant 0 : index
    %c0_6 = arith.constant 0 : index
    %8 = vector.load %arg1[%c0_5, %c0_6] : memref<1x32xf32, #tpu.memory_space<vmem>>, vector<1x32xf32>
    %c0_7 = arith.constant 0 : index
    %c32_8 = arith.constant 32 : index
    %9 = vector.load %arg2[%c0_7, %c32_8] : memref<40x128xf32, #tpu.memory_space<vmem>>, vector<32x32xf32>
    %cst_9 = arith.constant dense<0.000000e+00> : vector<1x32xf32>
    %10 = tpu.matmul %8, %9, %cst_9 {dimension_numbers = #tpu.dot_dimension_numbers<[1], [0], [0], [1], [0, 0, 1, 1], [], []>} : vector<1x32xf32>, vector<32x32xf32>, vector<1x32xf32> -> vector<1x32xf32>
    %c32_10 = arith.constant 32 : index
    %c32_11 = arith.constant 32 : index
    %11 = vector.load %arg2[%c32_10, %c32_11] : memref<40x128xf32, #tpu.memory_space<vmem>>, vector<1x32xf32>
    %12 = arith.addf %10, %11 : vector<1x32xf32>
    %cst_12 = arith.constant 0.000000e+00 : f32
    %13 = vector.broadcast %cst_12 : f32 to vector<1x32xf32>
    %14 = arith.maximumf %12, %13 : vector<1x32xf32>
    %c0_13 = arith.constant 0 : index
    %c64 = arith.constant 64 : index
    %15 = vector.load %arg2[%c0_13, %c64] : memref<40x128xf32, #tpu.memory_space<vmem>>, vector<32x8xf32>
    %cst_14 = arith.constant dense<0.000000e+00> : vector<8x8xf32>
    %16 = tpu.matmul %7, %15, %cst_14 {dimension_numbers = #tpu.dot_dimension_numbers<[1], [0], [0], [1], [0, 0, 1, 1], [], []>} : vector<8x32xf32>, vector<32x8xf32>, vector<8x8xf32> -> vector<8x8xf32>
    %c0_15 = arith.constant 0 : index
    %c72 = arith.constant 72 : index
    %17 = vector.load %arg2[%c0_15, %c72] : memref<40x128xf32, #tpu.memory_space<vmem>>, vector<32x8xf32>
    %cst_16 = arith.constant dense<0.000000e+00> : vector<1x8xf32>
    %18 = tpu.matmul %14, %17, %cst_16 {dimension_numbers = #tpu.dot_dimension_numbers<[1], [0], [0], [1], [0, 0, 1, 1], [], []>} : vector<1x32xf32>, vector<32x8xf32>, vector<1x8xf32> -> vector<1x8xf32>
    %cst_17 = arith.constant dense<0.000000e+00> : vector<8xf32>
    %19 = vector.multi_reduction <add>, %16, %cst_17 [0] : vector<8x8xf32> to vector<8xf32>
    %20 = vector.shape_cast %19 : vector<8xf32> to vector<1x8xf32>
    %21 = arith.addf %20, %18 : vector<1x8xf32>
    %c32_18 = arith.constant 32 : index
    %c64_19 = arith.constant 64 : index
    %22 = vector.load %arg2[%c32_18, %c64_19] : memref<40x128xf32, #tpu.memory_space<vmem>>, vector<1x8xf32>
    %23 = arith.addf %21, %22 : vector<1x8xf32>
    %24 = arith.negf %23 : vector<1x8xf32>
    %25 = math.exp %24 : vector<1x8xf32>
    %cst_20 = arith.constant 1.000000e+00 : f32
    %26 = vector.broadcast %cst_20 : f32 to vector<1x8xf32>
    %27 = arith.addf %26, %25 : vector<1x8xf32>
    %28 = arith.divf %26, %27 : vector<1x8xf32>
    %cst_21 = arith.constant 1.000000e+00 : f32
    %29 = vector.broadcast %cst_21 : f32 to vector<1x8xf32>
    %30 = arith.subf %29, %28 : vector<1x8xf32>
    %31 = tpu.iota {dimensions = array<i32: 0>} : vector<8x128xi32>
    %32 = tpu.iota {dimensions = array<i32: 1>} : vector<8x128xi32>
    %33 = vector.extract_strided_slice %30 {offsets = [0, 0], sizes = [1, 1], strides = [1, 1]} : vector<1x8xf32> to vector<1x1xf32>
    %34 = vector.extract_strided_slice %30 {offsets = [0, 4], sizes = [1, 1], strides = [1, 1]} : vector<1x8xf32> to vector<1x1xf32>
    %c0_i32 = arith.constant 0 : i32
    %35 = vector.broadcast %c0_i32 : i32 to vector<8x128xi32>
    %36 = arith.cmpi eq, %31, %35 : vector<8x128xi32>
    %c0_i32_22 = arith.constant 0 : i32
    %37 = vector.broadcast %c0_i32_22 : i32 to vector<8x128xi32>
    %38 = arith.cmpi eq, %32, %37 : vector<8x128xi32>
    %39 = arith.andi %36, %38 : vector<8x128xi1>
    %40 = arith.addf %33, %34 : vector<1x1xf32>
    %cst_23 = arith.constant 0.000000e+00 : f32
    %41 = vector.shape_cast %40 : vector<1x1xf32> to vector<1x1xf32>
    %42 = vector.broadcast %41 : vector<1x1xf32> to vector<8x128xf32>
    %43 = vector.broadcast %cst_23 : f32 to vector<8x128xf32>
    %44 = arith.select %39, %42, %43 : vector<8x128xi1>, vector<8x128xf32>
    %45 = vector.extract_strided_slice %30 {offsets = [0, 1], sizes = [1, 1], strides = [1, 1]} : vector<1x8xf32> to vector<1x1xf32>
    %46 = arith.mulf %33, %45 : vector<1x1xf32>
    %47 = vector.extract_strided_slice %30 {offsets = [0, 5], sizes = [1, 1], strides = [1, 1]} : vector<1x8xf32> to vector<1x1xf32>
    %48 = arith.mulf %34, %47 : vector<1x1xf32>
    %c0_i32_24 = arith.constant 0 : i32
    %49 = vector.broadcast %c0_i32_24 : i32 to vector<8x128xi32>
    %50 = arith.cmpi eq, %31, %49 : vector<8x128xi32>
    %c1_i32 = arith.constant 1 : i32
    %51 = vector.broadcast %c1_i32 : i32 to vector<8x128xi32>
    %52 = arith.cmpi eq, %32, %51 : vector<8x128xi32>
    %53 = arith.andi %50, %52 : vector<8x128xi1>
    %54 = arith.addf %46, %48 : vector<1x1xf32>
    %cst_25 = arith.constant 0.000000e+00 : f32
    %55 = vector.shape_cast %54 : vector<1x1xf32> to vector<1x1xf32>
    %56 = vector.broadcast %55 : vector<1x1xf32> to vector<8x128xf32>
    %57 = vector.broadcast %cst_25 : f32 to vector<8x128xf32>
    %58 = arith.select %53, %56, %57 : vector<8x128xi1>, vector<8x128xf32>
    %59 = arith.addf %44, %58 : vector<8x128xf32>
    %60 = vector.extract_strided_slice %30 {offsets = [0, 2], sizes = [1, 1], strides = [1, 1]} : vector<1x8xf32> to vector<1x1xf32>
    %61 = arith.mulf %46, %60 : vector<1x1xf32>
    %62 = vector.extract_strided_slice %30 {offsets = [0, 6], sizes = [1, 1], strides = [1, 1]} : vector<1x8xf32> to vector<1x1xf32>
    %63 = arith.mulf %48, %62 : vector<1x1xf32>
    %c0_i32_26 = arith.constant 0 : i32
    %64 = vector.broadcast %c0_i32_26 : i32 to vector<8x128xi32>
    %65 = arith.cmpi eq, %31, %64 : vector<8x128xi32>
    %c2_i32 = arith.constant 2 : i32
    %66 = vector.broadcast %c2_i32 : i32 to vector<8x128xi32>
    %67 = arith.cmpi eq, %32, %66 : vector<8x128xi32>
    %68 = arith.andi %65, %67 : vector<8x128xi1>
    %69 = arith.addf %61, %63 : vector<1x1xf32>
    %cst_27 = arith.constant 0.000000e+00 : f32
    %70 = vector.shape_cast %69 : vector<1x1xf32> to vector<1x1xf32>
    %71 = vector.broadcast %70 : vector<1x1xf32> to vector<8x128xf32>
    %72 = vector.broadcast %cst_27 : f32 to vector<8x128xf32>
    %73 = arith.select %68, %71, %72 : vector<8x128xi1>, vector<8x128xf32>
    %74 = arith.addf %59, %73 : vector<8x128xf32>
    %75 = vector.extract_strided_slice %30 {offsets = [0, 3], sizes = [1, 1], strides = [1, 1]} : vector<1x8xf32> to vector<1x1xf32>
    %76 = arith.mulf %61, %75 : vector<1x1xf32>
    %77 = vector.extract_strided_slice %30 {offsets = [0, 7], sizes = [1, 1], strides = [1, 1]} : vector<1x8xf32> to vector<1x1xf32>
    %78 = arith.mulf %63, %77 : vector<1x1xf32>
    %c0_i32_28 = arith.constant 0 : i32
    %79 = vector.broadcast %c0_i32_28 : i32 to vector<8x128xi32>
    %80 = arith.cmpi eq, %31, %79 : vector<8x128xi32>
    %c3_i32 = arith.constant 3 : i32
    %81 = vector.broadcast %c3_i32 : i32 to vector<8x128xi32>
    %82 = arith.cmpi eq, %32, %81 : vector<8x128xi32>
    %83 = arith.andi %80, %82 : vector<8x128xi1>
    %84 = arith.addf %76, %78 : vector<1x1xf32>
    %cst_29 = arith.constant 0.000000e+00 : f32
    %85 = vector.shape_cast %84 : vector<1x1xf32> to vector<1x1xf32>
    %86 = vector.broadcast %85 : vector<1x1xf32> to vector<8x128xf32>
    %87 = vector.broadcast %cst_29 : f32 to vector<8x128xf32>
    %88 = arith.select %83, %86, %87 : vector<8x128xi1>, vector<8x128xf32>
    %89 = arith.addf %74, %88 : vector<8x128xf32>
    %cst_30 = arith.constant 5.000000e-01 : f32
    %90 = vector.broadcast %cst_30 : f32 to vector<8x128xf32>
    %91 = arith.mulf %90, %89 : vector<8x128xf32>
    %c0_31 = arith.constant 0 : index
    %c0_32 = arith.constant 0 : index
    %92 = vector.load %arg3[%c0_31, %c0_32] : memref<8x128xf32, #tpu.memory_space<vmem>>, vector<8x128xf32>
    tpu.vector_store %arg3[%c0_31, %c0_32], %91 {strides = array<i32>} : memref<8x128xf32, #tpu.memory_space<vmem>>, vector<8x128xf32>,
    return
  }
}

</mosaic_0001>

<bundles_post_ra>
// kernel: mm_simple_forward.1
= control target key start
LH: loop header
LB: loop body
LE: loop exit
PB: predicated region body
PF: predicated region fallthrough
CT: control target
= control target key end

     0   :  { %8 = vsyncpa [#allocation3], 0  ;;  %s788_s0 = inlined_call_operand.hbm [shape: f32[8,32], index: 0, kind: input, shape index: {}]   ;;  %s789_s1 = inlined_call_operand.vmem [shape: f32[1,32], index: 1, kind: input, shape index: {}]   ;;  %s790_s2 = inlined_call_operand.hbm [shape: f32[40,128], index: 2, kind: input, shape index: {}]   ;;  %s791_s3 = inlined_call_operand.vmem [shape: f32[8,128], index: 3, kind: output, shape index: {}]  }
   0x1   :  { %9 = vsyncpa [#allocation5], 0  ;;  %s683_s12 = smov [#allocation2]   ;;  %s684_s14 = smov [#allocation4]  }
   0x2   :  { %s16_s13 = sshll.u32 %s683_s12, 4  ;;  %s27_s15 = sshll.u32 %s684_s14, 4  ;;  %s17_s13 = int_to_ptr.vmem [resolvable:$true] %s16_s13  ;;  %s717_s15 = int_to_ptr.vmem [resolvable:$true] %s27_s15 }
   0x3   :  { %s635_s18 = scalar_lea.hbm %s788_s0, 128 }
   0x4   :  { %p636_p0 = scmp.ne.s32.totalorder %s788_s0, %s635_s18  ;;  %p639_p1 = scmp.lt.u32.totalorder %s635_s18, %s788_s0 }
   0x6   :  { %p641_p2 = pnand %p639_p1, %p636_p0 }
   0x8   :  { %644 = shalt.err (!%p641_p2)
}
   0x9   :  { %s645_s23 = scalar_lea.vmem %s17_s13, 128  ;;  %p650_p4 = scmp.lt.s32.totalorder %s17_s13, %s17_s13 }
   0xa   :  { %p646_p3 = scmp.ne.s32.totalorder %s17_s13, %s645_s23  ;;  %p651_p5 = scmp.lt.s32.totalorder %s645_s23, %s645_s23 }
   0xc   :  { %p652_p6 = por %p651_p5, %p650_p4 }
   0xe   :  { %p653_p7 = pnand %p652_p6, %p646_p3 }
  0x10   :  { %656 = shalt.err (!%p653_p7)
}
  0x11   :  { %19 = dma.hbm_to_vmem [thread:$0]  %s788_s0, 128, %s17_s13, [#allocation3]  }
  0x12   :  { %s657_s28 = scalar_lea.hbm %s790_s2, 640 }
  0x13   :  { %p658_p8 = scmp.ne.s32.totalorder %s790_s2, %s657_s28  ;;  %p661_p9 = scmp.lt.u32.totalorder %s657_s28, %s790_s2 }
  0x15   :  { %p663_p10 = pnand %p661_p9, %p658_p8 }
  0x17   :  { %666 = shalt.err (!%p663_p10)
}
  0x18   :  { %s667_s6 = scalar_lea.vmem %s717_s15, 640  ;;  %p672_p12 = scmp.lt.s32.totalorder %s717_s15, %s717_s15 }
  0x19   :  { %p668_p11 = scmp.ne.s32.totalorder %s717_s15, %s667_s6  ;;  %p673_p13 = scmp.lt.s32.totalorder %s667_s6, %s667_s6 }
  0x1b   :  { %p674_p0 = por %p673_p13, %p672_p12 }
  0x1d   :  { %p675_p1 = pnand %p674_p0, %p668_p11 }
  0x1f   :  { %678 = shalt.err (!%p675_p1)
}
  0x20   :  { %s685_s0 = smov 128   ;;  %s686_s7 = smov 8  }
  0x21   :  { %33 = dma.hbm_to_vmem [thread:$0]  %s790_s2, 640, %s717_s15, [#allocation5], %s685_s0, %s685_s0, %s686_s7  }
  0x22   :  { %679 = dma.done.wait [#allocation3], 128  }
  0x23   :  { %680 = vsyncadd [#allocation3], 4294967168 }
  0x24   :  { %681 = dma.done.wait [#allocation5], 640  }
  0x25   :  { %682 = vsyncadd [#allocation5], 4294966656  ;;  %v687_v0 = vmov 0.0|0.0   ;;  %vm688_vm0 = vmmov 0   ;;  %v689_v1 = vmov 0.0   ;;  %v41_v2 = vld [vmem:[#allocation4] sm:$0xff]  ;;  %v46_v37 = vlaneseq }
  0x26   :  { %555 = vmatprep.subr.bf16.mxu0 %v687_v0  ;;  %519 = vmatprep.mubr.msk.f32.mxu0 %vm688_vm0, %v689_v1  ;;  %v42_v3 = vld [vmem:[#allocation4 + $0x8] sm:$0xff]  ;;  %v43_v4 = vld [vmem:[#allocation4 + $0x10] sm:$0xff]  ;;  %v44_v6 = vld [vmem:[#allocation4 + $0x18] sm:$0xff]  ;;  %s690_s2 = smov 96   ;;  %s691_s10 = smov 64   ;;  %vm50_vm1 = vcmask 261120  }
  0x27   :  { %561 = vmatprep.subr.bf16.mxu1 %v687_v0  ;;  %530 = vmatprep.mubr.msk.f32.mxu1 %vm688_vm0, %v689_v1  ;;  %v601_v5 = vpack.i.bf16 %v42_v3, %v41_v2  ;;  %v556_v7 = vpack.c.bf16 %v42_v3, %v41_v2  ;;  %v606_v8 = vpack.i.bf16 %v44_v6, %v43_v4  ;;  %v40_v10 = vld [vmem:[#allocation2] sm:$0xff]  ;;  %s692_s11 = smov 56   ;;  %v45_v11 = vld [vmem:[#allocation4 + $0x20] sm:$0x1]  ;;  %v770_v38 = vshrl.u32 %v46_v37, 7  ;;  %s694_s14 = smov 127  }
  0x28   :  { %v559_v9 = vpack.c.bf16 %v44_v6, %v43_v4  ;;  %v125_v29 = vld [vmem:[%s789_s1] sm:$0x1]  ;;  %vm390_vm2 = vcmask 64512   ;;  %s693_s1 = smov 126   ;;  %s695_s15 = smov 124  }
  0x29   :  { %602 = vrot.lane.b32.xlu0 %v601_v5, %s690_s2  ;;  %557 = vmatpush3.bf16.msra.mxu0 %v556_v7  ;;  %v48_v39 = vsub.s32 0, %v770_v38  ;;  %s696_s16 = smov 125   ;;  %vm414_vm3 = vcmp.eq.s32.totalorder %v770_v38, 0 }
  0x2a   :  { %558 = vmatprep.subr.bf16.mxu0 %v687_v0  ;;  %612 = vrot.lane.b32.xlu1 %v601_v5, %s691_s10 }
  0x2b   :  { %v49_v40 = vrot.slane %v45_v11, %v48_v39 }
  0x2d   :  { %607 = vrot.lane.b32.xlu0 %v606_v8, %s690_s2  ;;  %560 = vmatpush3.bf16.msra.mxu0 %v559_v9 }
  0x2e   :  { %617 = vrot.lane.b32.xlu1 %v606_v8, %s691_s10  ;;  %567 = vmatprep.subr.bf16.mxu0 %v687_v0 }
  0x30   :  { %520 = vmatmul.mubr.msk.f32.vlgmr.msra.gmra.mrb[0].mxu0 %vm50_vm1, %v40_v10 }
  0x31   :  { %622 = vrot.lane.b32.xlu0 %v601_v5, %s692_s11  ;;  %541 = vmatprep.mubr.msk.f32.mxu0 %vm688_vm0, %v689_v1 }
  0x32   :  { %627 = vrot.lane.b32.xlu1 %v606_v8, %s692_s11 }
  0x35   :  { %143 = vrot.lane.b32.xlu0 %v45_v11, %s690_s2 }
  0x36   :  { %399 = vrot.lane.b32.xlu1 %v45_v11, %s691_s10 }
  0x9b   :  { %v603_v12 = vpop.permute.xlu0 %602 }
  0x9c   :  { %v605_v13 = vunpack.i.h.bf16 %v603_v12  ;;  %v604_v14 = vunpack.i.l.bf16 %v603_v12  ;;  %v613_v15 = vpop.permute.xlu1 %612 }
  0x9d   :  { %v615_v16 = vunpack.i.h.bf16 %v613_v15  ;;  %v614_v17 = vunpack.i.l.bf16 %v613_v15 }
  0x9e   :  { %v562_v18 = vpack.c.bf16 %v605_v13, %v604_v14 }
  0x9f   :  { %v608_v19 = vpop.permute.xlu0 %607  ;;  %v568_v20 = vpack.c.bf16 %v615_v16, %v614_v17 }
  0xa0   :  { %v610_v21 = vunpack.i.h.bf16 %v608_v19  ;;  %v609_v22 = vunpack.i.l.bf16 %v608_v19  ;;  %563 = vmatpush3.bf16.msra.mxu1 %v562_v18  ;;  %v618_v23 = vpop.permute.xlu1 %617  ;;  %v413_v19 = vand.u32 127, %v46_v37 }
  0xa1   :  { %564 = vmatprep.subr.bf16.mxu1 %v687_v0  ;;  %v620_v24 = vunpack.i.h.bf16 %v618_v23  ;;  %v619_v25 = vunpack.i.l.bf16 %v618_v23  ;;  %569 = vmatpush3.bf16.msra.mxu0 %v568_v20 }
  0xa2   :  { %v565_v26 = vpack.c.bf16 %v610_v21, %v609_v22  ;;  %570 = vmatprep.subr.bf16.mxu0 %v687_v0  ;;  %vm415_vm4 = vcmp.eq.s32.totalorder %v413_v19, 0  ;;  %vm431_vm5 = vcmp.eq.s32.totalorder %v413_v19, 1  ;;  %vm448_vm7 = vcmp.eq.s32.totalorder %v413_v19, 2 }
  0xa3   :  { %v571_v27 = vpack.c.bf16 %v620_v24, %v619_v25  ;;  %v623_v28 = vpop.permute.xlu0 %622  ;;  %vm416_vm6 = vmand %vm414_vm3, %vm415_vm4  ;;  %vm465_vm9 = vcmp.eq.s32.totalorder %v413_v19, 3 }
  0xa4   :  { %566 = vmatpush3.bf16.msra.mxu1 %v565_v26  ;;  %v625_v30 = vunpack.i.h.bf16 %v623_v28  ;;  %v624_v31 = vunpack.i.l.bf16 %v623_v28  ;;  %v628_v32 = vpop.permute.xlu1 %627  ;;  %vm432_vm8 = vmand %vm414_vm3, %vm431_vm5 }
  0xa5   :  { %572 = vmatpush3.bf16.msra.mxu0 %v571_v27  ;;  %v630_v33 = vunpack.i.h.bf16 %v628_v32  ;;  %v629_v34 = vunpack.i.l.bf16 %v628_v32  ;;  %573 = vmatprep.subr.bf16.mxu1 %v687_v0  ;;  %vm449_vm10 = vmand %vm414_vm3, %vm448_vm7 }
  0xa6   :  { %v574_v35 = vpack.c.bf16 %v625_v30, %v624_v31  ;;  %vm466_vm11 = vmand %vm414_vm3, %vm465_vm9 }
  0xa7   :  { %531 = vmatmul.mubr.msk.f32.vlgmr.msra.gmra.mrb[0].mxu1 %vm50_vm1, %v125_v29  ;;  %v577_v36 = vpack.c.bf16 %v630_v33, %v629_v34  ;;  %v144_v45 = vpop.permute.xlu0 %143 }
  0xa8   :  { %575 = vmatpush3.bf16.msra.mxu1 %v574_v35  ;;  %552 = vmatprep.mubr.msk.f32.mxu1 %vm688_vm0, %v689_v1  ;;  %v400_v60 = vpop.permute.xlu1 %399 }
  0xa9   :  { %576 = vmatprep.subr.bf16.mxu1 %v687_v0 }
  0xac   :  { %578 = vmatpush3.bf16.msra.mxu1 %v577_v36 }
 0x103   :  { %v120_v41 = vpop.f32.mrb[0].mxu0 }
 0x104   :  { %v121_v42 = vadd.f32 %v120_v41, %v49_v40  ;;  %v521_v43 = vpop.f32.mrb[1].mxu0 }
 0x106   :  { %v124_v44 = vmax.f32 %v121_v42, 0.0 }
 0x108   :  { %542 = vmatmul.mubr.msk.f32.vlgmr.msra.gmra.mrb[2].mxu0 %vm50_vm1, %v124_v44 }
 0x17a   :  { %v215_v46 = vpop.f32.mrb[0].mxu1 }
 0x17b   :  { %v216_v47 = vadd.f32 %v215_v46, %v144_v45  ;;  %v532_v48 = vpop.f32.mrb[1].mxu1 }
 0x17d   :  { %v219_v49 = vmax.f32 %v216_v47, 0.0 }
 0x17f   :  { %553 = vmatmul.mubr.msk.f32.vlgmr.msra.gmra.mrb[2].mxu1 %vm50_vm1, %v219_v49 }
 0x1db   :  { %v301_v50 = vpop.f32.mrb[2].mxu0 }
 0x1dc   :  { %v543_v51 = vpop.f32.mrb[3].mxu0  ;;  %v391_v52 = vsel %vm390_vm2, %v301_v50, 0.0 }
 0x1dd   :  { %v392_v53 = vrot.slane %v391_v52, 4 }
 0x1df   :  { %v393_v54 = vadd.f32 %v392_v53, %v391_v52 }
 0x1e1   :  { %v394_v55 = vrot.slane %v393_v54, 2 }
 0x1e3   :  { %v395_v56 = vadd.f32 %v394_v55, %v393_v54 }
 0x1e5   :  { %v396_v57 = vrot.slane %v395_v56, 1 }
 0x1e7   :  { %v397_v58 = vadd.f32 %v396_v57, %v395_v56 }
 0x252   :  { %v386_v59 = vpop.f32.mrb[2].mxu1 }
 0x253   :  { %v398_v61 = vadd.f32 %v397_v58, %v386_v59  ;;  %v554_v62 = vpop.f32.mrb[3].mxu1 }
 0x255   :  { %v402_v63 = vadd.f32 %v400_v60, %v398_v61 }
 0x257   :  { %v490_v0 = vmul.f32 -1.442695, %v402_v63 }
 0x259   :  { %631 = vpow2.f32 %v490_v0 }
 0x263   :  { %v632_v1 = vpop.eup %631 }
 0x264   :  { %v406_v2 = vadd.f32 1.0, %v632_v1 }
 0x266   :  { %633 = vrcp.f32 %v406_v2 }
 0x270   :  { %v634_v3 = vpop.eup %633 }
 0x271   :  { %v409_v4 = vsub.f32 1.0, %v634_v3 }
 0x273   :  { %444 = vrot.lane.b32.xlu1 %v409_v4, %s693_s1  ;;  %427 = vrot.lane.b32.xlu0 %v409_v4, %s694_s14 }
 0x277   :  { %418 = vrot.lane.b32.xlu1 %v409_v4, %s695_s15  ;;  %461 = vrot.lane.b32.xlu0 %v409_v4, %s696_s16 }
 0x2e5   :  { %v445_v5 = vpop.permute.xlu1 %444  ;;  %v428_v6 = vpop.permute.xlu0 %427 }
 0x2e6   :  { %v430_v7 = vmul.f32 %v428_v6, %v409_v4 }
 0x2e8   :  { %434 = vrot.lane.b32.xlu0 %v430_v7, %s695_s15  ;;  %v447_v8 = vmul.f32 %v445_v5, %v430_v7 }
 0x2e9   :  { %v419_v9 = vpop.permute.xlu1 %418  ;;  %v462_v10 = vpop.permute.xlu0 %461 }
 0x2ea   :  { %v464_v11 = vmul.f32 %v462_v10, %v447_v8  ;;  %451 = vrot.lane.b32.xlu1 %v447_v8, %s695_s15  ;;  %v421_v12 = vadd.f32 %v419_v9, %v409_v4 }
 0x2ec   :  { %579 = vpush %v421_v12  ;;  %468 = vrot.lane.b32.xlu0 %v464_v11, %s695_s15 }
 0x31d   :  { %s580_s17 = spop %579 }
 0x31e   :  { %v424_v20 = vstv %s580_s17 }
 0x31f   :  { %v426_v22 = vsel %vm416_vm6, %v424_v20, 0.0 }
 0x35a   :  { %v435_v13 = vpop.permute.xlu0 %434 }
 0x35b   :  { %v437_v14 = vadd.f32 %v435_v13, %v430_v7 }
 0x35c   :  { %v452_v15 = vpop.permute.xlu1 %451 }
 0x35d   :  { %v454_v16 = vadd.f32 %v452_v15, %v447_v8  ;;  %581 = vpush %v437_v14 }
 0x35e   :  { %v469_v17 = vpop.permute.xlu0 %468 }
 0x35f   :  { %v471_v18 = vadd.f32 %v469_v17, %v464_v11  ;;  %583 = vpush %v454_v16 }
 0x361   :  { %585 = vpush %v471_v18 }
 0x38e   :  { %s582_s18 = spop %581 }
 0x38f   :  { %v440_v21 = vstv %s582_s18 }
 0x390   :  { %v442_v23 = vsel %vm432_vm8, %v440_v21, 0.0  ;;  %s584_s19 = spop %583 }
 0x391   :  { %v443_v24 = vadd.f32 %v442_v23, %v426_v22  ;;  %v457_v25 = vstv %s584_s19 }
 0x392   :  { %v459_v26 = vsel %vm449_vm10, %v457_v25, 0.0  ;;  %s586_s20 = spop %585 }
 0x393   :  { %v460_v27 = vadd.f32 %v459_v26, %v443_v24  ;;  %v474_v28 = vstv %s586_s20 }
 0x394   :  { %v476_v29 = vsel %vm466_vm11, %v474_v28, 0.0 }
 0x395   :  { %v477_v30 = vadd.f32 %v476_v29, %v460_v27 }
 0x397   :  { %v478_v31 = vmul.f32 0.5, %v477_v30 }
 0x399   :  { %479 = vst [vmem:[%s791_s3] sm:$0xff] %v478_v31 }
 0x39a   :  { %484 = vsyncpa [#allocation3], 1 }
 0x39b   :  { %485 = vsyncpa [#allocation5], 1 }

</bundles_post_ra>
